<compile_context>
chip_gen: v7x
topology: tpu7x:2x2x1
jax: 0.10.0
libtpu: 0.0.40
codegen_flags: <defaults>
</compile_context>

<pallas_src>
import math
from functools import partial

import jax
import jax.numpy as jnp
from jax.experimental import pallas as pl
from jax.experimental.pallas import tpu as pltpu

_INV_SQRT2 = 1.0 / math.sqrt(2.0)
_SQRT_2_OVER_PI = math.sqrt(2.0 / math.pi)
_MXU_ALIGN = 256  # v6e/v7x MXU is 2x 256x256; 256-alignment is also fine on v5e.


def _round_up(a, b):
    return ((a + b - 1) // b) * b


def _vmem_capacity_bytes():
    """Generation-aware VMEM capacity (128 MiB v5e/v6e, 64 MiB per TC on v7x)."""
    try:
        cap = getattr(pltpu.get_tpu_info(), "vmem_capacity_bytes", None)
        if cap:
            return int(cap)
    except Exception:
        pass
    return 64 * 1024 * 1024  # conservative fallback (v7x per-TensorCore)


def _largest_divisor_tile(total, cap, align):
    """Largest multiple of `align` that divides `total` and is <= cap."""
    best = align
    t = align
    while t <= min(cap, total):
        if total % t == 0:
            best = t
        t += align
    return best


def _gelu(h, approx):
    if approx:
        # tanh approximation: transcendental goes to the EUP slot, VALU stays free.
        return 0.5 * h * (1.0 + jnp.tanh(_SQRT_2_OVER_PI * (h + 0.044715 * h * h * h)))
    # Exact erf form -- matches torch.nn.GELU() default semantics.
    return 0.5 * h * (1.0 + jax.lax.erf(h * _INV_SQRT2))


# ----------------------------------------------------------------------------
# Kernels
# ----------------------------------------------------------------------------
def _ffn_kernel_resident(x_ref, w1_ref, b1_ref, w2_ref, b2_ref, o_ref, *, approx_gelu):
    # Whole hidden dim resident in VMEM: one k block, weights DMA'd once,
    # no accumulator scratch and no per-step read-modify-write.
    h = jnp.dot(x_ref[...], w1_ref[...], preferred_element_type=jnp.float32)
    h = _gelu(h + b1_ref[...], approx_gelu)
    out = jnp.dot(h.astype(w2_ref.dtype), w2_ref[...],
                  preferred_element_type=jnp.float32)
    o_ref[...] = (out + b2_ref[...]).astype(o_ref.dtype)


def _ffn_kernel_streamed(x_ref, w1_ref, b1_ref, w2_ref, b2_ref, o_ref, acc_ref,
                         *, approx_gelu):
    # H streamed along the trailing "arbitrary" axis; f32 VMEM accumulator.
    k = pl.program_id(1)

    @pl.when(k == 0)
    def _():
        acc_ref[...] = jnp.zeros_like(acc_ref)

    h = jnp.dot(x_ref[...], w1_ref[...], preferred_element_type=jnp.float32)
    h = _gelu(h + b1_ref[...], approx_gelu)
    acc_ref[...] += jnp.dot(h.astype(w2_ref.dtype), w2_ref[...],
                            preferred_element_type=jnp.float32)

    @pl.when(k == pl.num_programs(1) - 1)
    def _():
        o_ref[...] = (acc_ref[...] + b2_ref[...]).astype(o_ref.dtype)


# ----------------------------------------------------------------------------
# Host-side parameter preparation (run ONCE, not per layer call)
# ----------------------------------------------------------------------------
def prepare_ffn_params(w1, b1, w2, b2):
    """Pad weights to MXU-aligned shapes and cast biases to f32 once.

    w1: (C, H), b1: (H,), w2: (H, C), b2: (C,) -- weights are stored
    transposed relative to PyTorch nn.Linear so the kernel is two straight
    MXU matmuls with a fused GELU in between.
    """
    C, H = w1.shape
    C_pad = _round_up(C, _MXU_ALIGN)
    H_pad = _round_up(H, _MXU_ALIGN)
    w1p = w1 if (C_pad, H_pad) == (C, H) else jnp.pad(
        w1, ((0, C_pad - C), (0, H_pad - H)))
    w2p = w2 if (C_pad, H_pad) == (C, H) else jnp.pad(
        w2, ((0, H_pad - H), (0, C_pad - C)))
    b1p = (b1 if H_pad == H else jnp.pad(b1, (0, H_pad - H))
           ).astype(jnp.float32).reshape(1, H_pad)
    b2p = (b2 if C_pad == C else jnp.pad(b2, (0, C_pad - C))
           ).astype(jnp.float32).reshape(1, C_pad)
    return w1p, b1p, w2p, b2p


def _weight_spec(shape, index_map, buffered):
    # Deeper pipelining on the streamed weight slabs hides the wrap-around
    # fetch when the M-tile index increments (x tile + both weight slabs +
    # output writeback land on the same step otherwise).
    if buffered and hasattr(pl, "Buffered"):
        try:
            return pl.BlockSpec(shape, index_map, pipeline_mode=pl.Buffered(3))
        except TypeError:
            pass
    return pl.BlockSpec(shape, index_map)


# ----------------------------------------------------------------------------
# Main entry points
# ----------------------------------------------------------------------------
def ffn_pallas_prepared(x, w1p, b1p, w2p, b2p, *, in_features,
                        tm=None, th=None, approx_gelu=False):
    """FFN forward on pre-padded params (see prepare_ffn_params)."""
    orig_shape = x.shape
    C = in_features
    assert orig_shape[-1] == C
    C_pad, H_pad = w1p.shape

    x2d = x.reshape(-1, C)
    M = x2d.shape[0]
    M8 = _round_up(max(M, 1), 8)

    x_bytes = jnp.dtype(x.dtype).itemsize
    w_bytes = jnp.dtype(w1p.dtype).itemsize

    vmem_cap = _vmem_capacity_bytes()
    vmem_limit = int(vmem_cap * 3 // 4)          # 48 MiB on v7x, 96 MiB on v5e/v6e
    budget = vmem_limit - (8 << 20)              # headroom for internal scratch

    def fits(tm_, th_, wbuf):
        xo = 4 * tm_ * C_pad * x_bytes           # x + out, double-buffered
        w = wbuf * 2 * C_pad * th_ * w_bytes     # w1 + w2 slabs
        bias = wbuf * (th_ + C_pad) * 4
        acc = tm_ * C_pad * 4 if th_ < H_pad else 0
        return xo + w + bias + acc <= budget

    # ---- tile-size selection ----------------------------------------------
    if tm is not None:
        tm = min(_round_up(tm, 8), M8)
    if th is not None:
        th = _largest_divisor_tile(H_pad, min(_round_up(th, _MXU_ALIGN), H_pad),
                                   _MXU_ALIGN)

    if th is None:
        tm_res = tm if tm is not None else min(256, M8)
        if fits(tm_res, H_pad, 2):
            # Weights resident: block index never changes -> fetched once.
            th, tm = H_pad, tm_res
        else:
            # Stream H: prefer large tm (FLOPs per weight byte ~ tm), then
            # large th (amortizes per-step acc RMW / DMA overhead).
            tm_candidates = (tm,) if tm is not None else (
                min(1024, M8), min(512, M8), min(256, M8))
            th_candidates = [t for t in range(1024, 0, -_MXU_ALIGN)
                             if H_pad % t == 0]
            tm_sel, th_sel = tm_candidates[-1], _MXU_ALIGN
            found = False
            for tm_try in tm_candidates:
                for th_try in th_candidates:
                    if fits(tm_try, th_try, 3):
                        tm_sel, th_sel = tm_try, th_try
                        found = True
                        break
                if found:
                    break
            tm, th = tm_sel, th_sel
    elif tm is None:
        tm = min(256, M8)

    M_pad = _round_up(M, tm)

    # Pad activations only when actually needed (zero-fill, sliced off below).
    xd = x2d
    if (M_pad, C_pad) != (M, C):
        xd = jnp.pad(x2d, ((0, M_pad - M), (0, C_pad - C)))

    n_m = M_pad // tm
    n_k = H_pad // th

    if n_k == 1:
        kernel = partial(_ffn_kernel_resident, approx_gelu=approx_gelu)
        grid = (n_m,)
        in_specs = [
            pl.BlockSpec((tm, C_pad), lambda i: (i, 0)),      # x row tile
            pl.BlockSpec((C_pad, H_pad), lambda i: (0, 0)),   # w1 (resident)
            pl.BlockSpec((1, H_pad), lambda i: (0, 0)),       # b1 (f32)
            pl.BlockSpec((H_pad, C_pad), lambda i: (0, 0)),   # w2 (resident)
            pl.BlockSpec((1, C_pad), lambda i: (0, 0)),       # b2 (f32)
        ]
        out_specs = pl.BlockSpec((tm, C_pad), lambda i: (i, 0))
        scratch_shapes = []
        dim_sem = ("parallel",)
    else:
        kernel = partial(_ffn_kernel_streamed, approx_gelu=approx_gelu)
        grid = (n_m, n_k)
        in_specs = [
            pl.BlockSpec((tm, C_pad), lambda i, k: (i, 0)),               # x
            _weight_spec((C_pad, th), lambda i, k: (0, k), True),         # w1 slab
            pl.BlockSpec((1, th), lambda i, k: (0, k)),                   # b1 slab
            _weight_spec((th, C_pad), lambda i, k: (k, 0), True),         # w2 slab
            pl.BlockSpec((1, C_pad), lambda i, k: (0, 0)),                # b2
        ]
        out_specs = pl.BlockSpec((tm, C_pad), lambda i, k: (i, 0))
        scratch_shapes = [pltpu.VMEM((tm, C_pad), jnp.float32)]
        dim_sem = ("parallel", "arbitrary")

    out = pl.pallas_call(
        kernel,
        out_shape=jax.ShapeDtypeStruct((M_pad, C_pad), x.dtype),
        grid_spec=pltpu.PrefetchScalarGridSpec(
            num_scalar_prefetch=0,
            grid=grid,
            in_specs=in_specs,
            out_specs=out_specs,
            scratch_shapes=scratch_shapes,
        ),
        compiler_params=pltpu.CompilerParams(
            dimension_semantics=dim_sem,
            vmem_limit_bytes=vmem_limit,
        ),
    )(xd, w1p, b1p, w2p, b2p)

    return out[:M, :C].reshape(orig_shape)


def ffn_pallas(x, w1, b1, w2, b2, *, tm=None, th=None, approx_gelu=False):
    """One-shot convenience wrapper.  For repeated layer calls, prepare the
    params once with prepare_ffn_params() and use ffn_pallas_prepared()."""
    w1p, b1p, w2p, b2p = prepare_ffn_params(w1, b1, w2, b2)
    return ffn_pallas_prepared(x, w1p, b1p, w2p, b2p, in_features=w1.shape[0],
                               tm=tm, th=th, approx_gelu=approx_gelu)


def init_ffn_params(key, in_features, hidden_features, dtype=jnp.float32):
    """Mirrors the module init: trunc_normal(std=0.02) weights, zero biases.
    Weights stored transposed vs. nn.Linear for the kernel."""
    k1, k2 = jax.random.split(key)
    w1 = (jax.random.truncated_normal(
        k1, -2.0, 2.0, (in_features, hidden_features)) * 0.02).astype(dtype)
    w2 = (jax.random.truncated_normal(
        k2, -2.0, 2.0, (hidden_features, in_features)) * 0.02).astype(dtype)
    b1 = jnp.zeros((hidden_features,), dtype)
    b2 = jnp.zeros((in_features,), dtype)
    return w1, b1, w2, b2


def _reference(x, w1, b1, w2, b2):
    h = jnp.dot(x, w1, precision=jax.lax.Precision.HIGHEST) + b1
    h = 0.5 * h * (1.0 + jax.lax.erf(h / jnp.sqrt(2.0)))
    return jnp.dot(h, w2, precision=jax.lax.Precision.HIGHEST) + b2


if __name__ == "__main__":
    key = jax.random.PRNGKey(0)
    k1, k2, k3, k4, k5, k6 = jax.random.split(key, 6)

    # ---- Test 1: resident-weights path, deliberately unaligned dims --------
    batch, seq, in_features, hidden_features = 2, 40, 48, 160
    x = jax.random.normal(k1, (batch, seq, in_features), dtype=jnp.float32)
    w1, b1, w2, b2 = init_ffn_params(k2, in_features, hidden_features)
    # Non-zero biases purely to exercise the bias code paths.
    b1 = 0.05 * jax.random.normal(k3, (hidden_features,), jnp.float32)
    b2 = 0.05 * jax.random.normal(k4, (in_features,), jnp.float32)

    w1p, b1p, w2p, b2p = prepare_ffn_params(w1, b1, w2, b2)  # host-side, once
    y = ffn_pallas_prepared(x, w1p, b1p, w2p, b2p, in_features=in_features)
    jax.block_until_ready(y)
    y_ref = _reference(x, w1, b1, w2, b2)
    assert y.shape == x.shape
    assert jnp.allclose(y, y_ref, atol=1e-3, rtol=1e-3), "resident-path mismatch"

    # ---- Test 2: streamed-H path (multiple k blocks, buffered weight slabs) --
    in2, hid2 = 48, 640
    x2 = jax.random.normal(k5, (batch, seq, in2), dtype=jnp.float32)
    w1b, b1b, w2b, b2b = init_ffn_params(k6, in2, hid2)
    y2 = ffn_pallas(x2, w1b, b1b, w2b, b2b, tm=64, th=256)
    jax.block_until_ready(y2)
    y2_ref = _reference(x2, w1b, b1b, w2b, b2b)
    assert y2.shape == x2.shape
    assert jnp.allclose(y2, y2_ref, atol=1e-3, rtol=1e-3), "streamed-path mismatch"

    print("KERNEL_OK")
</pallas_src>

<mosaic_0001>
module attributes {stable_mosaic.version = 11 : i64} {
  func.func @_ffn_kernel_resident(%arg0: i32, %arg1: memref<80x256xf32, #tpu.memory_space<vmem>>, %arg2: memref<256x256xf32, #tpu.memory_space<vmem>>, %arg3: memref<1x256xf32, #tpu.memory_space<vmem>>, %arg4: memref<256x256xf32, #tpu.memory_space<vmem>>, %arg5: memref<1x256xf32, #tpu.memory_space<vmem>>, %arg6: memref<80x256xf32, #tpu.memory_space<vmem>>) attributes {dimension_semantics = [#tpu.dimension_semantics<parallel>], iteration_bounds = array<i64: 1>, scalar_prefetch = 0 : i64, scratch_operands = 0 : i64, tpu.core_type = #tpu.core_type<tc>, window_params = [{transform_indices = @transform_0, window_bounds = array<i64: 80, 256>}, {pipeline_mode = #tpu.pipeline_mode<synchronous>, transform_indices = @transform_1, window_bounds = array<i64: 256, 256>}, {pipeline_mode = #tpu.pipeline_mode<synchronous>, transform_indices = @transform_2, window_bounds = array<i64: 1, 256>}, {pipeline_mode = #tpu.pipeline_mode<synchronous>, transform_indices = @transform_3, window_bounds = array<i64: 256, 256>}, {pipeline_mode = #tpu.pipeline_mode<synchronous>, transform_indices = @transform_4, window_bounds = array<i64: 1, 256>}, {transform_indices = @transform_5, window_bounds = array<i64: 80, 256>}]} {
    %c0 = arith.constant 0 : index
    %c0_0 = arith.constant 0 : index
    %0 = vector.load %arg1[%c0, %c0_0] : memref<80x256xf32, #tpu.memory_space<vmem>>, vector<80x256xf32>
    %c0_1 = arith.constant 0 : index
    %c0_2 = arith.constant 0 : index
    %1 = vector.load %arg2[%c0_1, %c0_2] : memref<256x256xf32, #tpu.memory_space<vmem>>, vector<256x256xf32>
    %cst = arith.constant dense<0.000000e+00> : vector<80x256xf32>
    %2 = tpu.matmul %0, %1, %cst {dimension_numbers = #tpu.dot_dimension_numbers<[1], [0], [0], [1], [0, 0, 1, 1], [], []>} : vector<80x256xf32>, vector<256x256xf32>, vector<80x256xf32> -> vector<80x256xf32>
    %c0_3 = arith.constant 0 : index
    %c0_4 = arith.constant 0 : index
    %3 = vector.load %arg3[%c0_3, %c0_4] : memref<1x256xf32, #tpu.memory_space<vmem>>, vector<1x256xf32>
    %4 = vector.broadcast %3 : vector<1x256xf32> to vector<80x256xf32>
    %5 = arith.addf %2, %4 : vector<80x256xf32>
    %cst_5 = arith.constant 5.000000e-01 : f32
    %6 = vector.broadcast %cst_5 : f32 to vector<80x256xf32>
    %7 = arith.mulf %6, %5 : vector<80x256xf32>
    %cst_6 = arith.constant 0.707106769 : f32
    %8 = vector.broadcast %cst_6 : f32 to vector<80x256xf32>
    %9 = arith.mulf %5, %8 : vector<80x256xf32>
    %10 = math.erf %9 : vector<80x256xf32>
    %cst_7 = arith.constant 1.000000e+00 : f32
    %11 = vector.broadcast %cst_7 : f32 to vector<80x256xf32>
    %12 = arith.addf %11, %10 : vector<80x256xf32>
    %13 = arith.mulf %7, %12 : vector<80x256xf32>
    %c0_8 = arith.constant 0 : index
    %c0_9 = arith.constant 0 : index
    %14 = vector.load %arg4[%c0_8, %c0_9] : memref<256x256xf32, #tpu.memory_space<vmem>>, vector<256x256xf32>
    %cst_10 = arith.constant dense<0.000000e+00> : vector<80x256xf32>
    %15 = tpu.matmul %13, %14, %cst_10 {dimension_numbers = #tpu.dot_dimension_numbers<[1], [0], [0], [1], [0, 0, 1, 1], [], []>} : vector<80x256xf32>, vector<256x256xf32>, vector<80x256xf32> -> vector<80x256xf32>
    %c0_11 = arith.constant 0 : index
    %c0_12 = arith.constant 0 : index
    %16 = vector.load %arg5[%c0_11, %c0_12] : memref<1x256xf32, #tpu.memory_space<vmem>>, vector<1x256xf32>
    %17 = vector.broadcast %16 : vector<1x256xf32> to vector<80x256xf32>
    %18 = arith.addf %15, %17 : vector<80x256xf32>
    %c0_13 = arith.constant 0 : index
    %c0_14 = arith.constant 0 : index
    %19 = vector.load %arg6[%c0_13, %c0_14] : memref<80x256xf32, #tpu.memory_space<vmem>>, vector<80x256xf32>
    tpu.vector_store %arg6[%c0_13, %c0_14], %18 {strides = array<i32>} : memref<80x256xf32, #tpu.memory_space<vmem>>, vector<80x256xf32>,
    return
  }
  func.func @transform_0(%arg0: i32) -> (i32, i32) {
    %c0_i32 = arith.constant 0 : i32
    %c0_i32_0 = arith.constant 0 : i32
    return %arg0, %c0_i32 : i32, i32
  }
  func.func @transform_1(%arg0: i32) -> (i32, i32) {
    %c0_i32 = arith.constant 0 : i32
    %c0_i32_0 = arith.constant 0 : i32
    %c0_i32_1 = arith.constant 0 : i32
    return %c0_i32, %c0_i32_0 : i32, i32
  }
  func.func @transform_2(%arg0: i32) -> (i32, i32) {
    %c0_i32 = arith.constant 0 : i32
    %c0_i32_0 = arith.constant 0 : i32
    %c0_i32_1 = arith.constant 0 : i32
    return %c0_i32, %c0_i32_0 : i32, i32
  }
  func.func @transform_3(%arg0: i32) -> (i32, i32) {
    %c0_i32 = arith.constant 0 : i32
    %c0_i32_0 = arith.constant 0 : i32
    %c0_i32_1 = arith.constant 0 : i32
    return %c0_i32, %c0_i32_0 : i32, i32
  }
  func.func @transform_4(%arg0: i32) -> (i32, i32) {
    %c0_i32 = arith.constant 0 : i32
    %c0_i32_0 = arith.constant 0 : i32
    %c0_i32_1 = arith.constant 0 : i32
    return %c0_i32, %c0_i32_0 : i32, i32
  }
  func.func @transform_5(%arg0: i32) -> (i32, i32) {
    %c0_i32 = arith.constant 0 : i32
    %c0_i32_0 = arith.constant 0 : i32
    return %arg0, %c0_i32 : i32, i32
  }
}

</mosaic_0001>

<bundles_post_ra>
// kernel: tpu_custom_call.1
= control target key start
LH: loop header
LB: loop body
LE: loop exit
PB: predicated region body
PF: predicated region fallthrough
CT: control target
= control target key end

     0   :  { %10 = vsyncpa [#allocation3], 0  ;;  %s1067_s0 = inlined_call_operand.hbm [shape: f32[80,256], index: 0, kind: input, shape index: {}]   ;;  %s1068_s1 = inlined_call_operand.hbm [shape: f32[256,256], index: 1, kind: input, shape index: {}]   ;;  %s1069_s2 = inlined_call_operand.vmem [shape: f32[1,256], index: 2, kind: input, shape index: {}]   ;;  %s1070_s3 = inlined_call_operand.hbm [shape: f32[256,256], index: 3, kind: input, shape index: {}]   ;;  %s1071_s4 = inlined_call_operand.vmem [shape: f32[1,256], index: 4, kind: input, shape index: {}]   ;;  %s1072_s5 = inlined_call_operand.hbm [shape: f32[80,256], index: 5, kind: output, shape index: {}]  }
   0x1   :  { %11 = vsyncpa [#allocation6], 0 }
   0x2   :  { %12 = vsyncpa [#allocation4], 0  ;;  %s890_s18 = smov [#allocation5]   ;;  %s891_s20 = smov [#allocation2]  }
   0x3   :  { %s30_s19 = sshll.u32 %s890_s18, 4  ;;  %s18_s21 = sshll.u32 %s891_s20, 4  ;;  %s31_s19 = int_to_ptr.vmem [resolvable:$true] %s30_s19  ;;  %s926_s21 = int_to_ptr.vmem [resolvable:$true] %s18_s21 }
   0x4   :  { %s796_s24 = scalar_lea.hbm %s1068_s1, 8192 }
   0x5   :  { %p797_p0 = scmp.ne.s32.totalorder %s1068_s1, %s796_s24  ;;  %p800_p1 = scmp.lt.u32.totalorder %s796_s24, %s1068_s1 }
   0x7   :  { %p802_p2 = pnand %p800_p1, %p797_p0 }
   0x9   :  { %805 = shalt.err (!%p802_p2)
}
   0xa   :  { %s806_s29 = scalar_lea.vmem %s31_s19, 8192  ;;  %p811_p4 = scmp.lt.s32.totalorder %s31_s19, %s31_s19 }
   0xb   :  { %p807_p3 = scmp.ne.s32.totalorder %s31_s19, %s806_s29  ;;  %p812_p5 = scmp.lt.s32.totalorder %s806_s29, %s806_s29 }
   0xd   :  { %p813_p6 = por %p812_p5, %p811_p4 }
   0xf   :  { %p814_p7 = pnand %p813_p6, %p807_p3 }
  0x11   :  { %817 = shalt.err (!%p814_p7)
}
  0x12   :  { %s892_s30 = smov 256   ;;  %s893_s6 = smov 16  }
  0x13   :  { %36 = dma.hbm_to_vmem [thread:$0]  %s1068_s1, 8192, %s31_s19, [#allocation6], %s892_s30, %s892_s30, %s893_s6  }
  0x14   :  { %s818_s11 = scalar_lea.hbm %s1067_s0, 2560 }
  0x15   :  { %p819_p8 = scmp.ne.s32.totalorder %s1067_s0, %s818_s11  ;;  %p822_p9 = scmp.lt.u32.totalorder %s818_s11, %s1067_s0 }
  0x17   :  { %p824_p10 = pnand %p822_p9, %p819_p8 }
  0x19   :  { %827 = shalt.err (!%p824_p10)
}
  0x1a   :  { %s828_s16 = scalar_lea.vmem %s926_s21, 2560  ;;  %p833_p12 = scmp.lt.s32.totalorder %s926_s21, %s926_s21 }
  0x1b   :  { %p829_p11 = scmp.ne.s32.totalorder %s926_s21, %s828_s16  ;;  %p834_p13 = scmp.lt.s32.totalorder %s828_s16, %s828_s16 }
  0x1d   :  { %p835_p0 = por %p834_p13, %p833_p12 }
  0x1f   :  { %p836_p1 = pnand %p835_p0, %p829_p11 }
  0x21   :  { %839 = shalt.err (!%p836_p1)
}
  0x22   :  { %24 = dma.hbm_to_vmem [thread:$0]  %s1067_s0, 2560, %s926_s21, [#allocation3], %s892_s30, %s892_s30, %s893_s6  }
  0x23   :  { %s894_s18 = smov [#allocation7]   ;;  %s840_s23 = scalar_lea.hbm %s1070_s3, 8192 }
  0x24   :  { %s44_s19 = sshll.u32 %s894_s18, 4  ;;  %p841_p2 = scmp.ne.s32.totalorder %s1070_s3, %s840_s23  ;;  %s45_s19 = int_to_ptr.vmem [resolvable:$true] %s44_s19 }
  0x25   :  { %p844_p3 = scmp.lt.u32.totalorder %s840_s23, %s1070_s3 }
  0x27   :  { %p846_p4 = pnand %p844_p3, %p841_p2 }
  0x29   :  { %849 = shalt.err (!%p846_p4)
}
  0x2a   :  { %s850_s28 = scalar_lea.vmem %s45_s19, 8192  ;;  %p855_p6 = scmp.lt.s32.totalorder %s45_s19, %s45_s19 }
  0x2b   :  { %p851_p5 = scmp.ne.s32.totalorder %s45_s19, %s850_s28  ;;  %p856_p7 = scmp.lt.s32.totalorder %s850_s28, %s850_s28 }
  0x2d   :  { %p857_p8 = por %p856_p7, %p855_p6 }
  0x2f   :  { %p858_p9 = pnand %p857_p8, %p851_p5 }
  0x31   :  { %861 = shalt.err (!%p858_p9)
}
  0x32   :  { %50 = dma.hbm_to_vmem [thread:$0]  %s1070_s3, 8192, %s45_s19, [#allocation6], %s892_s30, %s892_s30, %s893_s6  }
  0x33   :  { %884 = dma.done.wait [#allocation3], 2560  }
  0x34   :  { %885 = vsyncadd [#allocation3], 4294964736 }
  0x35   :  { %886 = dma.done.wait [#allocation6], 16384  }
  0x36   :  { %887 = vsyncadd [#allocation6], 4294950912  ;;  %v83_v0 = vld [vmem:[#allocation5 + $0x8] sm:$0xff]  ;;  %v85_v1 = vld [vmem:[#allocation5 + $0x18] sm:$0xff] }
  0x37   :  { %v82_v2 = vld [vmem:[#allocation5] sm:$0xff]  ;;  %v622_v3 = vpack.c.bf16 %v85_v1, %v83_v0  ;;  %v84_v4 = vld [vmem:[#allocation5 + $0x10] sm:$0xff]  ;;  %v87_v5 = vld [vmem:[#allocation5 + $0x28] sm:$0xff] }
  0x38   :  { %v89_v6 = vld [vmem:[#allocation5 + $0x38] sm:$0xff]  ;;  %v624_v7 = vpack.c.bf16 %v84_v4, %v82_v2  ;;  %v86_v9 = vld [vmem:[#allocation5 + $0x20] sm:$0xff]  ;;  %v88_v10 = vld [vmem:[#allocation5 + $0x30] sm:$0xff] }
  0x39   :  { %v626_v8 = vpack.c.bf16 %v89_v6, %v87_v5  ;;  %v91_v11 = vld [vmem:[#allocation5 + $0x48] sm:$0xff]  ;;  %623 = vmatprep.subr.bf16.mxu0 %v622_v3  ;;  %v93_v12 = vld [vmem:[#allocation5 + $0x58] sm:$0xff]  ;;  %v628_v13 = vpack.c.bf16 %v88_v10, %v86_v9  ;;  %v90_v15 = vld [vmem:[#allocation5 + $0x40] sm:$0xff] }
  0x3a   :  { %625 = vmatpush1.bf16.msra.mxu0 %v624_v7  ;;  %v630_v14 = vpack.c.bf16 %v93_v12, %v91_v11  ;;  %v92_v16 = vld [vmem:[#allocation5 + $0x50] sm:$0xff]  ;;  %v95_v17 = vld [vmem:[#allocation5 + $0x68] sm:$0xff]  ;;  %v97_v18 = vld [vmem:[#allocation5 + $0x78] sm:$0xff] }
  0x3b   :  { %627 = vmatprep.subr.bf16.mxu0 %v626_v8  ;;  %v632_v19 = vpack.c.bf16 %v92_v16, %v90_v15  ;;  %v634_v20 = vpack.c.bf16 %v97_v18, %v95_v17  ;;  %v94_v21 = vld [vmem:[#allocation5 + $0x60] sm:$0xff]  ;;  %v96_v22 = vld [vmem:[#allocation5 + $0x70] sm:$0xff]  ;;  %v99_v23 = vld [vmem:[#allocation5 + $0x88] sm:$0xff] }
  0x3c   :  { %v101_v24 = vld [vmem:[#allocation5 + $0x98] sm:$0xff]  ;;  %v636_v25 = vpack.c.bf16 %v96_v22, %v94_v21  ;;  %v98_v27 = vld [vmem:[#allocation5 + $0x80] sm:$0xff]  ;;  %v100_v28 = vld [vmem:[#allocation5 + $0x90] sm:$0xff] }
  0x3d   :  { %v638_v26 = vpack.c.bf16 %v101_v24, %v99_v23  ;;  %v103_v29 = vld [vmem:[#allocation5 + $0xa8] sm:$0xff]  ;;  %v105_v30 = vld [vmem:[#allocation5 + $0xb8] sm:$0xff]  ;;  %v640_v31 = vpack.c.bf16 %v100_v28, %v98_v27  ;;  %v102_v33 = vld [vmem:[#allocation5 + $0xa0] sm:$0xff] }
  0x3e   :  { %629 = vmatpush1.bf16.msra.mxu0 %v628_v13  ;;  %v642_v32 = vpack.c.bf16 %v105_v30, %v103_v29  ;;  %v104_v34 = vld [vmem:[#allocation5 + $0xb0] sm:$0xff]  ;;  %v107_v35 = vld [vmem:[#allocation5 + $0xc8] sm:$0xff]  ;;  %v109_v36 = vld [vmem:[#allocation5 + $0xd8] sm:$0xff] }
  0x3f   :  { %631 = vmatprep.subr.bf16.mxu0 %v630_v14  ;;  %v644_v37 = vpack.c.bf16 %v104_v34, %v102_v33  ;;  %v646_v38 = vpack.c.bf16 %v109_v36, %v107_v35  ;;  %v106_v39 = vld [vmem:[#allocation5 + $0xc0] sm:$0xff]  ;;  %v108_v40 = vld [vmem:[#allocation5 + $0xd0] sm:$0xff]  ;;  %v63_v41 = vld [vmem:[#allocation2 + $0x8] sm:$0xff] }
  0x40   :  { %v111_v42 = vld [vmem:[#allocation5 + $0xe8] sm:$0xff]  ;;  %v113_v43 = vld [vmem:[#allocation5 + $0xf8] sm:$0xff]  ;;  %222 = vmatprep.mubr.f32.mxu0 %v63_v41  ;;  %v648_v44 = vpack.c.bf16 %v108_v40, %v106_v39  ;;  %v110_v46 = vld [vmem:[#allocation5 + $0xe0] sm:$0xff] }
  0x41   :  { %v650_v45 = vpack.c.bf16 %v113_v43, %v111_v42  ;;  %v112_v47 = vld [vmem:[#allocation5 + $0xf0] sm:$0xff]  ;;  %v115_v48 = vld [vmem:[#allocation5 + $0x108] sm:$0xff]  ;;  %v117_v49 = vld [vmem:[#allocation5 + $0x118] sm:$0xff] }
  0x42   :  { %633 = vmatpush1.bf16.msra.mxu0 %v632_v19  ;;  %v114_v50 = vld [vmem:[#allocation5 + $0x100] sm:$0xff]  ;;  %v116_v51 = vld [vmem:[#allocation5 + $0x110] sm:$0xff]  ;;  %v652_v52 = vpack.c.bf16 %v112_v47, %v110_v46  ;;  %v119_v53 = vld [vmem:[#allocation5 + $0x128] sm:$0xff]  ;;  %v654_v58 = vpack.c.bf16 %v117_v49, %v115_v48 }
  0x43   :  { %635 = vmatprep.subr.bf16.mxu0 %v634_v20  ;;  %v121_v54 = vld [vmem:[#allocation5 + $0x138] sm:$0xff]  ;;  %v384_v55 = vld [vmem:[#allocation7 + $0x8] sm:$0xff]  ;;  %v383_v57 = vld [vmem:[#allocation7] sm:$0xff]  ;;  %v656_v5 = vpack.c.bf16 %v116_v51, %v114_v50 }
  0x44   :  { %v386_v56 = vld [vmem:[#allocation7 + $0x18] sm:$0xff]  ;;  %v385_v60 = vld [vmem:[#allocation7 + $0x10] sm:$0xff]  ;;  %v388_v61 = vld [vmem:[#allocation7 + $0x28] sm:$0xff]  ;;  %v658_v9 = vpack.c.bf16 %v121_v54, %v119_v53 }
  0x45   :  { %v686_v59 = vpack.c.bf16 %v386_v56, %v384_v55  ;;  %v390_v62 = vld [vmem:[#allocation7 + $0x38] sm:$0xff]  ;;  %v688_v63 = vpack.c.bf16 %v385_v60, %v383_v57  ;;  %v387_v1 = vld [vmem:[#allocation7 + $0x20] sm:$0xff]  ;;  %v389_v2 = vld [vmem:[#allocation7 + $0x30] sm:$0xff] }
  0x46   :  { %637 = vmatpush1.bf16.msra.mxu0 %v636_v25  ;;  %v690_v0 = vpack.c.bf16 %v390_v62, %v388_v61  ;;  %v392_v3 = vld [vmem:[#allocation7 + $0x48] sm:$0xff]  ;;  %v394_v4 = vld [vmem:[#allocation7 + $0x58] sm:$0xff]  ;;  %v118_v6 = vld [vmem:[#allocation5 + $0x120] sm:$0xff]  ;;  %v692_v8 = vpack.c.bf16 %v389_v2, %v387_v1 }
  0x47   :  { %639 = vmatprep.subr.bf16.mxu0 %v638_v26  ;;  %687 = vmatprep.subr.bf16.mxu1 %v686_v59  ;;  %v120_v7 = vld [vmem:[#allocation5 + $0x130] sm:$0xff]  ;;  %v123_v10 = vld [vmem:[#allocation5 + $0x148] sm:$0xff]  ;;  %v694_v11 = vpack.c.bf16 %v394_v4, %v392_v3  ;;  %v391_v12 = vld [vmem:[#allocation7 + $0x40] sm:$0xff] }
  0x48   :  { %689 = vmatpush1.bf16.msra.mxu1 %v688_v63  ;;  %v393_v13 = vld [vmem:[#allocation7 + $0x50] sm:$0xff]  ;;  %v125_v14 = vld [vmem:[#allocation5 + $0x158] sm:$0xff]  ;;  %v396_v15 = vld [vmem:[#allocation7 + $0x68] sm:$0xff]  ;;  %v660_v17 = vpack.c.bf16 %v120_v7, %v118_v6 }
  0x49   :  { %691 = vmatprep.subr.bf16.mxu1 %v690_v0  ;;  %v398_v16 = vld [vmem:[#allocation7 + $0x78] sm:$0xff]  ;;  %v122_v18 = vld [vmem:[#allocation5 + $0x140] sm:$0xff]  ;;  %v124_v19 = vld [vmem:[#allocation5 + $0x150] sm:$0xff]  ;;  %v696_v20 = vpack.c.bf16 %v393_v13, %v391_v12  ;;  %v662_v21 = vpack.c.bf16 %v125_v14, %v123_v10 }
  0x4a   :  { %641 = vmatpush1.bf16.msra.mxu0 %v640_v31  ;;  %v127_v22 = vld [vmem:[#allocation5 + $0x168] sm:$0xff]  ;;  %v698_v23 = vpack.c.bf16 %v398_v16, %v396_v15  ;;  %v395_v24 = vld [vmem:[#allocation7 + $0x60] sm:$0xff]  ;;  %v397_v25 = vld [vmem:[#allocation7 + $0x70] sm:$0xff]  ;;  %v664_v29 = vpack.c.bf16 %v124_v19, %v122_v18 }
  0x4b   :  { %643 = vmatprep.subr.bf16.mxu0 %v642_v32  ;;  %v129_v26 = vld [vmem:[#allocation5 + $0x178] sm:$0xff]  ;;  %v400_v27 = vld [vmem:[#allocation7 + $0x88] sm:$0xff]  ;;  %v126_v30 = vld [vmem:[#allocation5 + $0x160] sm:$0xff]  ;;  %v700_v32 = vpack.c.bf16 %v397_v25, %v395_v24 }
  0x4c   :  { %693 = vmatpush1.bf16.msra.mxu1 %v692_v8  ;;  %v402_v28 = vld [vmem:[#allocation7 + $0x98] sm:$0xff]  ;;  %v128_v31 = vld [vmem:[#allocation5 + $0x170] sm:$0xff]  ;;  %v666_v33 = vpack.c.bf16 %v129_v26, %v127_v22  ;;  %v131_v34 = vld [vmem:[#allocation5 + $0x188] sm:$0xff] }
  0x4d   :  { %695 = vmatprep.subr.bf16.mxu1 %v694_v11  ;;  %v702_v35 = vpack.c.bf16 %v402_v28, %v400_v27  ;;  %v399_v36 = vld [vmem:[#allocation7 + $0x80] sm:$0xff]  ;;  %v404_v39 = vld [vmem:[#allocation7 + $0xa8] sm:$0xff]  ;;  %v406_v40 = vld [vmem:[#allocation7 + $0xb8] sm:$0xff]  ;;  %v668_v41 = vpack.c.bf16 %v128_v31, %v126_v30 }
  0x4e   :  { %645 = vmatpush1.bf16.msra.mxu0 %v644_v37  ;;  %v401_v37 = vld [vmem:[#allocation7 + $0x90] sm:$0xff]  ;;  %v130_v42 = vld [vmem:[#allocation5 + $0x180] sm:$0xff]  ;;  %v135_v46 = vld [vmem:[#allocation5 + $0x1a8] sm:$0xff]  ;;  %v706_v47 = vpack.c.bf16 %v406_v40, %v404_v39 }
  0x4f   :  { %647 = vmatprep.subr.bf16.mxu0 %v646_v38  ;;  %v133_v38 = vld [vmem:[#allocation5 + $0x198] sm:$0xff]  ;;  %v132_v43 = vld [vmem:[#allocation5 + $0x190] sm:$0xff]  ;;  %v403_v48 = vld [vmem:[#allocation7 + $0xa0] sm:$0xff] }
  0x50   :  { %697 = vmatpush1.bf16.msra.mxu1 %v696_v20  ;;  %v405_v49 = vld [vmem:[#allocation7 + $0xb0] sm:$0xff]  ;;  %v137_v50 = vld [vmem:[#allocation5 + $0x1b8] sm:$0xff]  ;;  %v408_v51 = vld [vmem:[#allocation7 + $0xc8] sm:$0xff]  ;;  %v672_v53 = vpack.c.bf16 %v132_v43, %v130_v42 }
  0x51   :  { %699 = vmatprep.subr.bf16.mxu1 %v698_v23  ;;  %v134_v54 = vld [vmem:[#allocation5 + $0x1a0] sm:$0xff]  ;;  %v136_v55 = vld [vmem:[#allocation5 + $0x1b0] sm:$0xff]  ;;  %v708_v56 = vpack.c.bf16 %v405_v49, %v403_v48  ;;  %v674_v57 = vpack.c.bf16 %v137_v50, %v135_v46  ;;  %v141_v62 = vld [vmem:[#allocation5 + $0x1d8] sm:$0xff] }
  0x52   :  { %649 = vmatpush1.bf16.msra.mxu0 %v648_v44  ;;  %v704_v44 = vpack.c.bf16 %v401_v37, %v399_v36  ;;  %v407_v60 = vld [vmem:[#allocation7 + $0xc0] sm:$0xff]  ;;  %v409_v61 = vld [vmem:[#allocation7 + $0xd0] sm:$0xff]  ;;  %v412_v63 = vld [vmem:[#allocation7 + $0xe8] sm:$0xff]  ;;  %v676_v1 = vpack.c.bf16 %v136_v55, %v134_v54 }
  0x53   :  { %651 = vmatprep.subr.bf16.mxu0 %v650_v45  ;;  %v670_v45 = vpack.c.bf16 %v133_v38, %v131_v34  ;;  %v414_v0 = vld [vmem:[#allocation7 + $0xf8] sm:$0xff]  ;;  %v138_v2 = vld [vmem:[#allocation5 + $0x1c0] sm:$0xff]  ;;  %v140_v3 = vld [vmem:[#allocation5 + $0x1d0] sm:$0xff]  ;;  %v712_v4 = vpack.c.bf16 %v409_v61, %v407_v60 }
  0x54   :  { %701 = vmatpush1.bf16.msra.mxu1 %v700_v32  ;;  %v143_v6 = vld [vmem:[#allocation5 + $0x1e8] sm:$0xff]  ;;  %v714_v7 = vpack.c.bf16 %v414_v0, %v412_v63  ;;  %v411_v8 = vld [vmem:[#allocation7 + $0xe0] sm:$0xff]  ;;  %v145_v10 = vld [vmem:[#allocation5 + $0x1f8] sm:$0xff]  ;;  %v680_v13 = vpack.c.bf16 %v140_v3, %v138_v2 }
  0x55   :  { %703 = vmatprep.subr.bf16.mxu1 %v702_v35  ;;  %v416_v11 = vld [vmem:[#allocation7 + $0x108] sm:$0xff]  ;;  %v418_v12 = vld [vmem:[#allocation7 + $0x118] sm:$0xff]  ;;  %v142_v14 = vld [vmem:[#allocation5 + $0x1e0] sm:$0xff]  ;;  %v682_v16 = vpack.c.bf16 %v145_v10, %v143_v6 }
  0x56   :  { %653 = vmatpush1.bf16.msra.mxu0 %v652_v52  ;;  %v410_v52 = vld [vmem:[#allocation7 + $0xd8] sm:$0xff]  ;;  %v718_v18 = vpack.c.bf16 %v418_v12, %v416_v11  ;;  %v415_v19 = vld [vmem:[#allocation7 + $0x100] sm:$0xff]  ;;  %v417_v20 = vld [vmem:[#allocation7 + $0x110] sm:$0xff] }
  0x57   :  { %655 = vmatprep.subr.bf16.mxu0 %v654_v58  ;;  %v139_v58 = vld [vmem:[#allocation5 + $0x1c8] sm:$0xff]  ;;  %v710_v59 = vpack.c.bf16 %v410_v52, %v408_v51  ;;  %v422_v22 = vld [vmem:[#allocation7 + $0x138] sm:$0xff]  ;;  %v720_v24 = vpack.c.bf16 %v417_v20, %v415_v19  ;;  %v419_v26 = vld [vmem:[#allocation7 + $0x120] sm:$0xff]  ;;  %v148_v20 = vlaneseq }
  0x58   :  { %705 = vmatpush1.bf16.msra.mxu1 %v704_v44  ;;  %v421_v27 = vld [vmem:[#allocation7 + $0x130] sm:$0xff]  ;;  %v424_v28 = vld [vmem:[#allocation7 + $0x148] sm:$0xff]  ;;  %v62_v30 = vld [vmem:[#allocation2] sm:$0xff] }
  0x59   :  { %707 = vmatprep.subr.bf16.mxu1 %v706_v47  ;;  %v724_v31 = vpack.c.bf16 %v421_v27, %v419_v26  ;;  %v65_v32 = vld [vmem:[#allocation2 + $0x18] sm:$0xff]  ;;  %v423_v34 = vld [vmem:[#allocation7 + $0x140] sm:$0xff]  ;;  %v425_v35 = vld [vmem:[#allocation7 + $0x150] sm:$0xff] }
  0x5a   :  { %657 = vmatpush1.bf16.msra.mxu0 %v656_v5  ;;  %v678_v5 = vpack.c.bf16 %v141_v62, %v139_v58  ;;  %v64_v36 = vld [vmem:[#allocation2 + $0x10] sm:$0xff]  ;;  %v728_v37 = vpack.c.bf16 %v425_v35, %v423_v34  ;;  %v67_v38 = vld [vmem:[#allocation2 + $0x28] sm:$0xff]  ;;  %v66_v39 = vld [vmem:[#allocation2 + $0x20] sm:$0xff] }
  0x5b   :  { %659 = vmatprep.subr.bf16.mxu0 %v658_v9  ;;  %v413_v9 = vld [vmem:[#allocation7 + $0xf0] sm:$0xff]  ;;  %v69_v40 = vld [vmem:[#allocation2 + $0x38] sm:$0xff]  ;;  %v71_v42 = vld [vmem:[#allocation2 + $0x48] sm:$0xff] }
  0x5c   :  { %709 = vmatpush1.bf16.msra.mxu1 %v708_v56  ;;  %v716_v15 = vpack.c.bf16 %v413_v9, %v411_v8  ;;  %v70_v43 = vld [vmem:[#allocation2 + $0x40] sm:$0xff]  ;;  %v73_v44 = vld [vmem:[#allocation2 + $0x58] sm:$0xff]  ;;  %v75_v46 = vld [vmem:[#allocation2 + $0x68] sm:$0xff] }
  0x5d   :  { %711 = vmatprep.subr.bf16.mxu1 %v710_v59  ;;  %v74_v47 = vld [vmem:[#allocation2 + $0x60] sm:$0xff]  ;;  %v77_v48 = vld [vmem:[#allocation2 + $0x78] sm:$0xff]  ;;  %v76_v49 = vld [vmem:[#allocation2 + $0x70] sm:$0xff] }
  0x5e   :  { %661 = vmatpush1.bf16.msra.mxu0 %v660_v17  ;;  %v144_v17 = vld [vmem:[#allocation5 + $0x1f0] sm:$0xff]  ;;  %v79_v50 = vld [vmem:[#allocation2 + $0x88] sm:$0xff]  ;;  %v78_v51 = vld [vmem:[#allocation2 + $0x80] sm:$0xff] }
  0x5f   :  { %663 = vmatprep.subr.bf16.mxu0 %v662_v21  ;;  %v420_v21 = vld [vmem:[#allocation7 + $0x128] sm:$0xff]  ;;  %v684_v23 = vpack.c.bf16 %v144_v17, %v142_v14  ;;  %v81_v52 = vld [vmem:[#allocation2 + $0x98] sm:$0xff]  ;;  %v429_v58 = vld [vmem:[#allocation7 + $0x170] sm:$0xff] }
  0x60   :  { %713 = vmatpush1.bf16.msra.mxu1 %v712_v4  ;;  %v722_v25 = vpack.c.bf16 %v422_v22, %v420_v21  ;;  %v428_v54 = vld [vmem:[#allocation7 + $0x168] sm:$0xff]  ;;  %v430_v55 = vld [vmem:[#allocation7 + $0x178] sm:$0xff]  ;;  %v431_v63 = vld [vmem:[#allocation7 + $0x180] sm:$0xff]  ;;  %v978_v21 = vshrl.u32 %v148_v20, 7 }
  0x61   :  { %715 = vmatprep.subr.bf16.mxu1 %v714_v7  ;;  %v730_v56 = vpack.c.bf16 %v430_v55, %v428_v54  ;;  %v432_v60 = vld [vmem:[#allocation7 + $0x188] sm:$0xff]  ;;  %v434_v61 = vld [vmem:[#allocation7 + $0x198] sm:$0xff]  ;;  %v433_v0 = vld [vmem:[#allocation7 + $0x190] sm:$0xff] }
  0x62   :  { %665 = vmatpush1.bf16.msra.mxu0 %v664_v29  ;;  %v426_v29 = vld [vmem:[#allocation7 + $0x158] sm:$0xff]  ;;  %v734_v62 = vpack.c.bf16 %v434_v61, %v432_v60  ;;  %v436_v2 = vld [vmem:[#allocation7 + $0x1a8] sm:$0xff]  ;;  %v437_v6 = vld [vmem:[#allocation7 + $0x1b0] sm:$0xff]  ;;  %v150_v22 = vsub.s32 0, %v978_v21 }
  0x63   :  { %667 = vmatprep.subr.bf16.mxu0 %v666_v33  ;;  %v726_v33 = vpack.c.bf16 %v426_v29, %v424_v28  ;;  %v438_v3 = vld [vmem:[#allocation7 + $0x1b8] sm:$0xff]  ;;  %v440_v8 = vld [vmem:[#allocation7 + $0x1c8] sm:$0xff]  ;;  %v439_v11 = vld [vmem:[#allocation7 + $0x1c0] sm:$0xff] }
  0x64   :  { %717 = vmatpush1.bf16.msra.mxu1 %v716_v15  ;;  %v738_v4 = vpack.c.bf16 %v438_v3, %v436_v2  ;;  %v442_v9 = vld [vmem:[#allocation7 + $0x1d8] sm:$0xff]  ;;  %v441_v12 = vld [vmem:[#allocation7 + $0x1d0] sm:$0xff]  ;;  %v444_v14 = vld [vmem:[#allocation7 + $0x1e8] sm:$0xff] }
  0x65   :  { %719 = vmatprep.subr.bf16.mxu1 %v718_v18  ;;  %v742_v10 = vpack.c.bf16 %v442_v9, %v440_v8  ;;  %v446_v15 = vld [vmem:[#allocation7 + $0x1f8] sm:$0xff]  ;;  %v443_v17 = vld [vmem:[#allocation7 + $0x1e0] sm:$0xff]  ;;  %v445_v18 = vld [vmem:[#allocation7 + $0x1f0] sm:$0xff] }
  0x66   :  { %669 = vmatpush1.bf16.msra.mxu0 %v668_v41  ;;  %v68_v41 = vld [vmem:[#allocation2 + $0x30] sm:$0xff]  ;;  %v748_v19 = vpack.c.bf16 %v445_v18, %v443_v17 }
  0x67   :  { %671 = vmatprep.subr.bf16.mxu0 %v670_v45  ;;  %v72_v45 = vld [vmem:[#allocation2 + $0x50] sm:$0xff] }
  0x68   :  { %721 = vmatpush1.bf16.msra.mxu1 %v720_v24  ;;  %v154_v24 = vsub.s32 1, %v978_v21 }
  0x69   :  { %723 = vmatprep.subr.bf16.mxu1 %v722_v25 }
  0x6a   :  { %673 = vmatpush1.bf16.msra.mxu0 %v672_v53  ;;  %v80_v53 = vld [vmem:[#allocation2 + $0x90] sm:$0xff] }
  0x6b   :  { %675 = vmatprep.subr.bf16.mxu0 %v674_v57  ;;  %v427_v57 = vld [vmem:[#allocation7 + $0x160] sm:$0xff] }
  0x6c   :  { %725 = vmatpush1.bf16.msra.mxu1 %v724_v31  ;;  %v732_v59 = vpack.c.bf16 %v429_v58, %v427_v57 }
  0x6d   :  { %727 = vmatprep.subr.bf16.mxu1 %v726_v33 }
  0x6e   :  { %677 = vmatpush1.bf16.msra.mxu0 %v676_v1  ;;  %v736_v1 = vpack.c.bf16 %v433_v0, %v431_v63 }
  0x6f   :  { %679 = vmatprep.subr.bf16.mxu0 %v678_v5  ;;  %v435_v5 = vld [vmem:[#allocation7 + $0x1a0] sm:$0xff] }
  0x70   :  { %729 = vmatpush1.bf16.msra.mxu1 %v728_v37  ;;  %v740_v7 = vpack.c.bf16 %v437_v6, %v435_v5 }
  0x71   :  { %731 = vmatprep.subr.bf16.mxu1 %v730_v56 }
  0x72   :  { %681 = vmatpush1.bf16.msra.mxu0 %v680_v13  ;;  %v744_v13 = vpack.c.bf16 %v441_v12, %v439_v11 }
  0x73   :  { %683 = vmatprep.subr.bf16.mxu0 %v682_v16  ;;  %v746_v16 = vpack.c.bf16 %v446_v15, %v444_v14 }
  0x74   :  { %733 = vmatpush1.bf16.msra.mxu1 %v732_v59 }
  0x75   :  { %735 = vmatprep.subr.bf16.mxu1 %v734_v62 }
  0x76   :  { %685 = vmatpush1.bf16.msra.mxu0 %v684_v23  ;;  %v146_v23 = vld [vmem:[%s1069_s2] sm:$0x3] }
  0x77   :  { %v987_v25 = vrot.slane %v146_v23, %v150_v22  ;;  %v991_v26 = vrot.slane %v146_v23, %v154_v24 }
  0x78   :  { %737 = vmatpush1.bf16.msra.mxu1 %v736_v1 }
  0x79   :  { %223 = vmatmul.mubr.f32.vlgmr.msra.gmra.mrb[0].mxu0 %v62_v30  ;;  %739 = vmatprep.subr.bf16.mxu1 %v738_v4 }
  0x7a   :  { %228 = vmatprep.mubr.f32.mxu0 %v65_v32 }
  0x7c   :  { %741 = vmatpush1.bf16.msra.mxu1 %v740_v7 }
  0x7d   :  { %229 = vmatmul.mubr.f32.gmra.mrb[2].mxu0 %v64_v36  ;;  %743 = vmatprep.subr.bf16.mxu1 %v742_v10 }
  0x7e   :  { %234 = vmatprep.mubr.f32.mxu0 %v67_v38 }
  0x80   :  { %745 = vmatpush1.bf16.msra.mxu1 %v744_v13 }
  0x81   :  { %235 = vmatmul.mubr.f32.gmra.mrb[4].mxu0 %v66_v39  ;;  %747 = vmatprep.subr.bf16.mxu1 %v746_v16 }
  0x82   :  { %240 = vmatprep.mubr.f32.mxu0 %v69_v40 }
  0x84   :  { %749 = vmatpush1.bf16.msra.mxu1 %v748_v19 }
  0x85   :  { %241 = vmatmul.mubr.f32.gmra.mrb[6].mxu0 %v68_v41 }
  0x86   :  { %246 = vmatprep.mubr.f32.mxu0 %v71_v42 }
  0x89   :  { %247 = vmatmul.mubr.f32.gmra.mrb[8].mxu0 %v70_v43 }
  0x8a   :  { %252 = vmatprep.mubr.f32.mxu0 %v73_v44 }
  0x8d   :  { %253 = vmatmul.mubr.f32.gmra.mrb[10].mxu0 %v72_v45 }
  0x8e   :  { %258 = vmatprep.mubr.f32.mxu0 %v75_v46 }
  0x91   :  { %259 = vmatmul.mubr.f32.gmra.mrb[12].mxu0 %v74_v47 }
  0x92   :  { %264 = vmatprep.mubr.f32.mxu0 %v77_v48 }
  0x95   :  { %265 = vmatmul.mubr.f32.gmra.mrb[14].mxu0 %v76_v49 }
  0x96   :  { %270 = vmatprep.mubr.f32.mxu0 %v79_v50 }
  0x99   :  { %271 = vmatmul.mubr.f32.gmra.mrb[16].mxu0 %v78_v51 }
  0x9a   :  { %276 = vmatprep.mubr.f32.mxu0 %v81_v52 }
  0x9d   :  { %277 = vmatmul.mubr.f32.gmra.mrb[18].mxu0 %v80_v53 }
 0x14c   :  { %v224_v27 = vpop.f32.mrb[0].mxu0 }
 0x14d   :  { %v225_v28 = vadd.f32 %v224_v27, %v987_v25  ;;  %v226_v29 = vpop.f32.mrb[1].mxu0 }
 0x14e   :  { %v227_v30 = vadd.f32 %v226_v29, %v991_v26 }
 0x14f   :  { %v303_v31 = vmul.f32 0.70710677, %v225_v28  ;;  %v283_v59 = vmul.f32 0.5, %v225_v28 }
 0x150   :  { %v304_v32 = vmul.f32 0.70710677, %v227_v30  ;;  %v230_v33 = vpop.f32.mrb[2].mxu0  ;;  %v284_v57 = vmul.f32 0.5, %v227_v30 }
 0x151   :  { %756 = verf.f32 %v303_v31  ;;  %v231_v34 = vadd.f32 %v230_v33, %v987_v25  ;;  %v232_v35 = vpop.f32.mrb[3].mxu0 }
 0x152   :  { %758 = verf.f32 %v304_v32  ;;  %v233_v36 = vadd.f32 %v232_v35, %v991_v26 }
 0x153   :  { %v305_v37 = vmul.f32 0.70710677, %v231_v34  ;;  %v285_v9 = vmul.f32 0.5, %v231_v34 }
 0x154   :  { %v306_v38 = vmul.f32 0.70710677, %v233_v36  ;;  %v236_v39 = vpop.f32.mrb[4].mxu0  ;;  %v286_v5 = vmul.f32 0.5, %v233_v36 }
 0x155   :  { %760 = verf.f32 %v305_v37  ;;  %v237_v40 = vadd.f32 %v236_v39, %v987_v25  ;;  %v238_v41 = vpop.f32.mrb[5].mxu0 }
 0x156   :  { %762 = verf.f32 %v306_v38  ;;  %v239_v42 = vadd.f32 %v238_v41, %v991_v26 }
 0x157   :  { %v307_v43 = vmul.f32 0.70710677, %v237_v40  ;;  %v287_v28 = vmul.f32 0.5, %v237_v40 }
 0x158   :  { %v308_v44 = vmul.f32 0.70710677, %v239_v42  ;;  %v242_v45 = vpop.f32.mrb[6].mxu0  ;;  %v288_v19 = vmul.f32 0.5, %v239_v42 }
 0x159   :  { %764 = verf.f32 %v307_v43  ;;  %v1000_v46 = vadd.f32 %v242_v45, %v987_v25  ;;  %v244_v47 = vpop.f32.mrb[7].mxu0 }
 0x15a   :  { %766 = verf.f32 %v308_v44  ;;  %v245_v48 = vadd.f32 %v244_v47, %v991_v26 }
 0x15b   :  { %v757_v49 = vpop.eup %756  ;;  %v309_v50 = vmul.f32 0.70710677, %v1000_v46  ;;  %v289_v42 = vmul.f32 0.5, %v1000_v46 }
 0x15c   :  { %v759_v51 = vpop.eup %758  ;;  %v343_v52 = vadd.f32 1.0, %v757_v49  ;;  %v310_v53 = vmul.f32 0.70710677, %v245_v48  ;;  %v248_v54 = vpop.f32.mrb[8].mxu0  ;;  %v290_v38 = vmul.f32 0.5, %v245_v48 }
 0x15d   :  { %768 = verf.f32 %v309_v50  ;;  %v1005_v55 = vadd.f32 %v248_v54, %v987_v25  ;;  %v250_v56 = vpop.f32.mrb[9].mxu0  ;;  %v344_v58 = vadd.f32 1.0, %v759_v51 }
 0x15e   :  { %770 = verf.f32 %v310_v53  ;;  %v1008_v60 = vadd.f32 %v250_v56, %v991_v26  ;;  %v363_v4 = vmul.f32 %v343_v52, %v283_v59 }
 0x15f   :  { %v761_v61 = vpop.eup %760  ;;  %v311_v62 = vmul.f32 0.70710677, %v1005_v55  ;;  %v364_v63 = vmul.f32 %v344_v58, %v284_v57  ;;  %v291_v57 = vmul.f32 0.5, %v1005_v55 }
 0x160   :  { %v763_v0 = vpop.eup %762  ;;  %v345_v1 = vadd.f32 1.0, %v761_v61  ;;  %v312_v2 = vmul.f32 0.70710677, %v1008_v60  ;;  %v254_v3 = vpop.f32.mrb[10].mxu0  ;;  %v292_v53 = vmul.f32 0.5, %v1008_v60 }
 0x161   :  { %v346_v6 = vadd.f32 1.0, %v763_v0  ;;  %772 = verf.f32 %v311_v62  ;;  %v1013_v7 = vadd.f32 %v254_v3, %v987_v25  ;;  %v256_v8 = vpop.f32.mrb[11].mxu0  ;;  %523 = vmatprep.mubr.f32.mxu1 %v364_v63 }
 0x162   :  { %774 = verf.f32 %v312_v2  ;;  %v1016_v10 = vadd.f32 %v256_v8, %v991_v26  ;;  %524 = vmatmul.mubr.f32.vlgmr.msra.gmra.mrb[0].mxu1 %v363_v4  ;;  %v365_v18 = vmul.f32 %v345_v1, %v285_v9 }
 0x163   :  { %v765_v11 = vpop.eup %764  ;;  %v313_v12 = vmul.f32 0.70710677, %v1013_v7  ;;  %v366_v13 = vmul.f32 %v346_v6, %v286_v5  ;;  %v293_v55 = vmul.f32 0.5, %v1013_v7 }
 0x164   :  { %v767_v14 = vpop.eup %766  ;;  %v347_v15 = vadd.f32 1.0, %v765_v11  ;;  %v314_v16 = vmul.f32 0.70710677, %v1016_v10  ;;  %v260_v17 = vpop.f32.mrb[12].mxu0  ;;  %v294_v3 = vmul.f32 0.5, %v1016_v10 }
 0x165   :  { %v348_v20 = vadd.f32 1.0, %v767_v14  ;;  %776 = verf.f32 %v313_v12  ;;  %v1021_v23 = vadd.f32 %v260_v17, %v987_v25  ;;  %v262_v27 = vpop.f32.mrb[13].mxu0  ;;  %529 = vmatprep.mubr.f32.mxu1 %v366_v13 }
 0x166   :  { %778 = verf.f32 %v314_v16  ;;  %v1024_v29 = vadd.f32 %v262_v27, %v991_v26  ;;  %530 = vmatmul.mubr.f32.gmra.mrb[2].mxu1 %v365_v18  ;;  %v367_v37 = vmul.f32 %v347_v15, %v287_v28 }
 0x167   :  { %v769_v30 = vpop.eup %768  ;;  %v315_v31 = vmul.f32 0.70710677, %v1021_v23  ;;  %v368_v32 = vmul.f32 %v348_v20, %v288_v19 }
 0x168   :  { %v771_v33 = vpop.eup %770  ;;  %v349_v34 = vadd.f32 1.0, %v769_v30  ;;  %v316_v35 = vmul.f32 0.70710677, %v1024_v29  ;;  %v266_v36 = vpop.f32.mrb[14].mxu0  ;;  %v296_v10 = vmul.f32 0.5, %v1024_v29 }
 0x169   :  { %v350_v39 = vadd.f32 1.0, %v771_v33  ;;  %780 = verf.f32 %v315_v31  ;;  %v1029_v40 = vadd.f32 %v266_v36, %v987_v25  ;;  %v268_v41 = vpop.f32.mrb[15].mxu0  ;;  %535 = vmatprep.mubr.f32.mxu1 %v368_v32 }
 0x16a   :  { %782 = verf.f32 %v316_v35  ;;  %v269_v43 = vadd.f32 %v268_v41, %v991_v26  ;;  %536 = vmatmul.mubr.f32.gmra.mrb[4].mxu1 %v367_v37  ;;  %v369_v52 = vmul.f32 %v349_v34, %v289_v42 }
 0x16b   :  { %v773_v44 = vpop.eup %772  ;;  %v317_v45 = vmul.f32 0.70710677, %v1029_v40  ;;  %v370_v47 = vmul.f32 %v350_v39, %v290_v38  ;;  %v297_v30 = vmul.f32 0.5, %v1029_v40 }
 0x16c   :  { %v775_v49 = vpop.eup %774  ;;  %v351_v50 = vadd.f32 1.0, %v773_v44  ;;  %v318_v48 = vmul.f32 0.70710677, %v269_v43  ;;  %v272_v51 = vpop.f32.mrb[16].mxu0  ;;  %v298_v27 = vmul.f32 0.5, %v269_v43 }
 0x16d   :  { %v352_v54 = vadd.f32 1.0, %v775_v49  ;;  %784 = verf.f32 %v317_v45  ;;  %v273_v56 = vadd.f32 %v272_v51, %v987_v25  ;;  %v274_v46 = vpop.f32.mrb[17].mxu0  ;;  %541 = vmatprep.mubr.f32.mxu1 %v370_v47  ;;  %v447_v49 = vld [vmem:[%s1071_s4] sm:$0x3]  ;;  %s895_s4 = smov [#allocation8]  }
 0x16e   :  { %786 = verf.f32 %v318_v48  ;;  %v275_v58 = vadd.f32 %v274_v46, %v991_v26  ;;  %542 = vmatmul.mubr.f32.gmra.mrb[6].mxu1 %v369_v52  ;;  %v371_v60 = vmul.f32 %v351_v50, %v291_v57  ;;  %v452_v50 = vrot.slane %v447_v49, %v150_v22  ;;  %s609_s8 = sshll.u32 %s895_s4, 4  ;;  %s610_s8 = int_to_ptr.vmem [resolvable:$true] %s609_s8 }
 0x16f   :  { %v777_v59 = vpop.eup %776  ;;  %v319_v61 = vmul.f32 0.70710677, %v273_v56  ;;  %v372_v62 = vmul.f32 %v352_v54, %v292_v53  ;;  %v299_v36 = vmul.f32 0.5, %v273_v56  ;;  %v456_v48 = vrot.slane %v447_v49, %v154_v24  ;;  %s862_s9 = scalar_lea.vmem %s610_s8, 2560  ;;  %p867_p11 = scmp.lt.s32.totalorder %s610_s8, %s610_s8 }
 0x170   :  { %v779_v63 = vpop.eup %778  ;;  %v353_v0 = vadd.f32 1.0, %v777_v59  ;;  %v320_v1 = vmul.f32 0.70710677, %v275_v58  ;;  %v278_v2 = vpop.f32.mrb[18].mxu0  ;;  %v300_v35 = vmul.f32 0.5, %v275_v58  ;;  %p863_p10 = scmp.ne.s32.totalorder %s610_s8, %s862_s9  ;;  %p868_p12 = scmp.lt.s32.totalorder %s862_s9, %s862_s9 }
 0x171   :  { %v354_v4 = vadd.f32 1.0, %v779_v63  ;;  %788 = verf.f32 %v319_v61  ;;  %v279_v5 = vadd.f32 %v278_v2, %v987_v25  ;;  %v280_v6 = vpop.f32.mrb[19].mxu0  ;;  %547 = vmatprep.mubr.f32.mxu1 %v372_v62  ;;  %v295_v25 = vmul.f32 0.5, %v1021_v23 }
 0x172   :  { %790 = verf.f32 %v320_v1  ;;  %v281_v8 = vadd.f32 %v280_v6, %v991_v26  ;;  %548 = vmatmul.mubr.f32.gmra.mrb[8].mxu1 %v371_v60  ;;  %v373_v16 = vmul.f32 %v353_v0, %v293_v55  ;;  %p869_p13 = por %p868_p12, %p867_p11 }
 0x173   :  { %v781_v9 = vpop.eup %780  ;;  %v321_v11 = vmul.f32 0.70710677, %v279_v5  ;;  %v374_v12 = vmul.f32 %v354_v4, %v294_v3  ;;  %v301_v40 = vmul.f32 0.5, %v279_v5 }
 0x174   :  { %v783_v13 = vpop.eup %782  ;;  %v355_v14 = vadd.f32 1.0, %v781_v9  ;;  %v322_v15 = vmul.f32 0.70710677, %v281_v8  ;;  %v302_v43 = vmul.f32 0.5, %v281_v8  ;;  %p870_p0 = pnand %p869_p13, %p863_p10 }
 0x175   :  { %v356_v17 = vadd.f32 1.0, %v783_v13  ;;  %792 = verf.f32 %v321_v11  ;;  %553 = vmatprep.mubr.f32.mxu1 %v374_v12 }
 0x176   :  { %794 = verf.f32 %v322_v15  ;;  %554 = vmatmul.mubr.f32.gmra.mrb[10].mxu1 %v373_v16  ;;  %v375_v20 = vmul.f32 %v355_v14, %v295_v25 }
 0x177   :  { %v785_v7 = vpop.eup %784  ;;  %v376_v18 = vmul.f32 %v356_v17, %v296_v10 }
 0x178   :  { %v787_v26 = vpop.eup %786  ;;  %v357_v19 = vadd.f32 1.0, %v785_v7 }
 0x179   :  { %v358_v28 = vadd.f32 1.0, %v787_v26  ;;  %559 = vmatprep.mubr.f32.mxu1 %v376_v18 }
 0x17a   :  { %560 = vmatmul.mubr.f32.gmra.mrb[12].mxu1 %v375_v20  ;;  %v377_v34 = vmul.f32 %v357_v19, %v297_v30 }
 0x17b   :  { %v789_v31 = vpop.eup %788  ;;  %v378_v29 = vmul.f32 %v358_v28, %v298_v27 }
 0x17c   :  { %v791_v32 = vpop.eup %790  ;;  %v359_v33 = vadd.f32 1.0, %v789_v31 }
 0x17d   :  { %v360_v23 = vadd.f32 1.0, %v791_v32  ;;  %565 = vmatprep.mubr.f32.mxu1 %v378_v29 }
 0x17e   :  { %566 = vmatmul.mubr.f32.gmra.mrb[14].mxu1 %v377_v34  ;;  %v379_v42 = vmul.f32 %v359_v33, %v299_v36 }
 0x17f   :  { %v793_v37 = vpop.eup %792  ;;  %v380_v38 = vmul.f32 %v360_v23, %v300_v35 }
 0x180   :  { %v795_v39 = vpop.eup %794  ;;  %v361_v41 = vadd.f32 1.0, %v793_v37 }
 0x181   :  { %v362_v44 = vadd.f32 1.0, %v795_v39  ;;  %571 = vmatprep.mubr.f32.mxu1 %v380_v38 }
 0x182   :  { %572 = vmatmul.mubr.f32.gmra.mrb[16].mxu1 %v379_v42  ;;  %v381_v47 = vmul.f32 %v361_v41, %v301_v40 }
 0x183   :  { %v382_v45 = vmul.f32 %v362_v44, %v302_v43 }
 0x185   :  { %577 = vmatprep.mubr.f32.mxu1 %v382_v45 }
 0x186   :  { %578 = vmatmul.mubr.f32.gmra.mrb[18].mxu1 %v381_v47 }
 0x235   :  { %v525_v51 = vpop.f32.mrb[0].mxu1 }
 0x236   :  { %v526_v52 = vadd.f32 %v525_v51, %v452_v50  ;;  %v527_v53 = vpop.f32.mrb[1].mxu1 }
 0x237   :  { %v528_v54 = vadd.f32 %v527_v53, %v456_v48 }
 0x238   :  { %584 = vst [vmem:[#allocation8] sm:$0xff] %v526_v52 }
 0x239   :  { %585 = vst [vmem:[#allocation8 + $0x8] sm:$0xff] %v528_v54  ;;  %v531_v56 = vpop.f32.mrb[2].mxu1 }
 0x23a   :  { %v532_v46 = vadd.f32 %v531_v56, %v452_v50  ;;  %v533_v57 = vpop.f32.mrb[3].mxu1 }
 0x23b   :  { %v534_v58 = vadd.f32 %v533_v57, %v456_v48 }
 0x23c   :  { %586 = vst [vmem:[#allocation8 + $0x10] sm:$0xff] %v532_v46 }
 0x23d   :  { %587 = vst [vmem:[#allocation8 + $0x18] sm:$0xff] %v534_v58  ;;  %v537_v59 = vpop.f32.mrb[4].mxu1 }
 0x23e   :  { %v538_v61 = vadd.f32 %v537_v59, %v452_v50  ;;  %v539_v62 = vpop.f32.mrb[5].mxu1 }
 0x23f   :  { %v540_v63 = vadd.f32 %v539_v62, %v456_v48 }
 0x240   :  { %588 = vst [vmem:[#allocation8 + $0x20] sm:$0xff] %v538_v61 }
 0x241   :  { %589 = vst [vmem:[#allocation8 + $0x28] sm:$0xff] %v540_v63  ;;  %v543_v21 = vpop.f32.mrb[6].mxu1 }
 0x242   :  { %v544_v22 = vadd.f32 %v543_v21, %v452_v50  ;;  %v545_v24 = vpop.f32.mrb[7].mxu1 }
 0x243   :  { %v546_v0 = vadd.f32 %v545_v24, %v456_v48 }
 0x244   :  { %590 = vst [vmem:[#allocation8 + $0x30] sm:$0xff] %v544_v22 }
 0x245   :  { %591 = vst [vmem:[#allocation8 + $0x38] sm:$0xff] %v546_v0  ;;  %v549_v1 = vpop.f32.mrb[8].mxu1 }
 0x246   :  { %v550_v2 = vadd.f32 %v549_v1, %v452_v50  ;;  %v551_v60 = vpop.f32.mrb[9].mxu1 }
 0x247   :  { %v552_v3 = vadd.f32 %v551_v60, %v456_v48 }
 0x248   :  { %592 = vst [vmem:[#allocation8 + $0x40] sm:$0xff] %v550_v2 }
 0x249   :  { %593 = vst [vmem:[#allocation8 + $0x48] sm:$0xff] %v552_v3  ;;  %v555_v4 = vpop.f32.mrb[10].mxu1 }
 0x24a   :  { %v556_v5 = vadd.f32 %v555_v4, %v452_v50  ;;  %v557_v6 = vpop.f32.mrb[11].mxu1 }
 0x24b   :  { %v558_v55 = vadd.f32 %v557_v6, %v456_v48 }
 0x24c   :  { %594 = vst [vmem:[#allocation8 + $0x50] sm:$0xff] %v556_v5 }
 0x24d   :  { %595 = vst [vmem:[#allocation8 + $0x58] sm:$0xff] %v558_v55  ;;  %v561_v8 = vpop.f32.mrb[12].mxu1 }
 0x24e   :  { %v562_v9 = vadd.f32 %v561_v8, %v452_v50  ;;  %v563_v11 = vpop.f32.mrb[13].mxu1 }
 0x24f   :  { %v564_v12 = vadd.f32 %v563_v11, %v456_v48 }
 0x250   :  { %596 = vst [vmem:[#allocation8 + $0x60] sm:$0xff] %v562_v9 }
 0x251   :  { %597 = vst [vmem:[#allocation8 + $0x68] sm:$0xff] %v564_v12  ;;  %v567_v13 = vpop.f32.mrb[14].mxu1 }
 0x252   :  { %v568_v14 = vadd.f32 %v567_v13, %v452_v50  ;;  %v569_v15 = vpop.f32.mrb[15].mxu1 }
 0x253   :  { %v570_v16 = vadd.f32 %v569_v15, %v456_v48 }
 0x254   :  { %598 = vst [vmem:[#allocation8 + $0x70] sm:$0xff] %v568_v14 }
 0x255   :  { %599 = vst [vmem:[#allocation8 + $0x78] sm:$0xff] %v570_v16  ;;  %v573_v10 = vpop.f32.mrb[16].mxu1 }
 0x256   :  { %v574_v17 = vadd.f32 %v573_v10, %v452_v50  ;;  %v575_v25 = vpop.f32.mrb[17].mxu1 }
 0x257   :  { %v576_v7 = vadd.f32 %v575_v25, %v456_v48 }
 0x258   :  { %600 = vst [vmem:[#allocation8 + $0x80] sm:$0xff] %v574_v17 }
 0x259   :  { %601 = vst [vmem:[#allocation8 + $0x88] sm:$0xff] %v576_v7  ;;  %v579_v18 = vpop.f32.mrb[18].mxu1 }
 0x25a   :  { %v580_v26 = vadd.f32 %v579_v18, %v452_v50  ;;  %v581_v19 = vpop.f32.mrb[19].mxu1 }
 0x25b   :  { %v582_v20 = vadd.f32 %v581_v19, %v456_v48 }
 0x25c   :  { %602 = vst [vmem:[#allocation8 + $0x90] sm:$0xff] %v580_v26 }
 0x25d   :  { %603 = vst [vmem:[#allocation8 + $0x98] sm:$0xff] %v582_v20 }
 0x25e   :  { %873 = shalt.err (!%p870_p0)
}
 0x25f   :  { %s874_s12 = scalar_lea.hbm %s1072_s5, 2560 }
 0x260   :  { %p875_p1 = scmp.ne.s32.totalorder %s1072_s5, %s874_s12  ;;  %p878_p2 = scmp.lt.u32.totalorder %s874_s12, %s1072_s5 }
 0x262   :  { %p880_p3 = pnand %p878_p2, %p875_p1 }
 0x264   :  { %883 = shalt.err (!%p880_p3)
}
 0x265   :  { %615 = dma.vmem_to_hbm [thread:$0]  %s610_s8, 2560, %s1072_s5, [#allocation4], %s892_s30, %s892_s30, %s893_s6  }
 0x266   :  { %888 = dma.done.wait [#allocation4], 2560  }
 0x267   :  { %889 = vsyncadd [#allocation4], 4294964736 }
 0x268   :  { %619 = vsyncpa [#allocation3], 1 }
 0x269   :  { %620 = vsyncpa [#allocation6], 1 }
 0x26a   :  { %621 = vsyncpa [#allocation4], 1 }

</bundles_post_ra>
